<compile_context>
chip_gen: v7x
topology: tpu7x:2x2x1
jax: 0.10.0
libtpu: 0.0.40
codegen_flags: <defaults>
</compile_context>

<pallas_src>
import functools

import jax
import jax.numpy as jnp
from jax import lax
from jax.experimental import pallas as pl
from jax.experimental.pallas import tpu as pltpu

N_HEAD = 12


def _pick_heads_per_group(n_head, head_dim):
    """Smallest divisor g of n_head with g*head_dim lane-aligned (multiple of 128)."""
    for g in range(1, n_head + 1):
        if n_head % g == 0 and (g * head_dim) % 128 == 0:
            return g
    # Fallback (tiny d_model): one group spanning all heads -> block == full dim.
    return n_head


def _pick_query_tile(seq_len):
    """Query-tile size: full sequence for typical BERT lengths, tiled beyond that."""
    if seq_len <= 512:
        return seq_len
    for tq in (512, 256, 128):
        if seq_len % tq == 0:
            return tq
    return seq_len


def _extract_qk_kernel(hf_ref, hq_ref, wq_ref, bq_ref, wk_ref, bk_ref,
                       out_ref, k_scratch, *, heads_per_group, head_dim):
    # hf_ref : (1, S, D)  bf16   full hidden rows (for K)
    # hq_ref : (1, TQ, D) bf16   current query tile (for Q)
    # wq_ref : (D, GW)    bf16   Q weight slice for this head group
    # bq_ref : (1, GW)    f32
    # wk_ref : (D, GW)    bf16
    # bk_ref : (1, GW)    f32
    # out_ref: (1, G, TQ, S) f32
    # k_scratch: (S, GW)  bf16   persists across q tiles for this (batch, group)
    t = pl.program_id(2)

    # K projection for this (batch, head-group): full sequence, only on first q-tile.
    @pl.when(t == 0)
    def _():
        k = jnp.dot(hf_ref[0], wk_ref[...],
                    preferred_element_type=jnp.float32) + bk_ref[...]
        k_scratch[...] = k.astype(k_scratch.dtype)

    # Q projection for this query tile (bf16 operands, f32 accumulation + f32 bias).
    q = jnp.dot(hq_ref[0], wq_ref[...],
                preferred_element_type=jnp.float32) + bq_ref[...]
    qb = q.astype(jnp.bfloat16)          # (TQ, GW)
    kb = k_scratch[...]                  # (S,  GW)

    # Per-head scores: contract the last dim of both operands (no explicit .T).
    for i in range(heads_per_group):
        lo = i * head_dim
        s = lax.dot_general(
            qb[:, lo:lo + head_dim], kb[:, lo:lo + head_dim],
            dimension_numbers=(((1,), (1,)), ((), ())),
            preferred_element_type=jnp.float32)          # (TQ, S)
        out_ref[0, i] = s.astype(out_ref.dtype)


def extract_qk(hidden_states, wq, bq, wk, bk):
    """hidden_states: [B, S, D]; wq/wk: [D, D] ([in, out]); bq/bk: [D].

    Returns QK^T of shape [B, N_HEAD, S, S] (float32).
    """
    B, S, D = hidden_states.shape
    assert D % N_HEAD == 0, "d_model must be divisible by 12"
    head_dim = D // N_HEAD

    G = _pick_heads_per_group(N_HEAD, head_dim)   # heads per grid group
    n_groups = N_HEAD // G
    gw = G * head_dim                             # lane width of one head group
    TQ = _pick_query_tile(S)
    n_q = S // TQ

    # bf16 operands for the MXU; biases / accumulation / output stay f32.
    h16 = hidden_states.astype(jnp.bfloat16)
    wq16 = wq.astype(jnp.bfloat16)
    wk16 = wk.astype(jnp.bfloat16)
    bq2 = bq.reshape(1, D).astype(jnp.float32)
    bk2 = bk.reshape(1, D).astype(jnp.float32)

    out_shape = jax.ShapeDtypeStruct((B, N_HEAD, S, S), jnp.float32)

    # Explicit scoped-VMEM budget (double-buffered blocks + K scratch), clamped
    # so the same tiling compiles predictably on v5e / v6e / v7x.
    def nbytes(shape, itemsize):
        n = 1
        for d in shape:
            n *= d
        return n * itemsize

    est = 2 * (nbytes((1, S, D), 2) + nbytes((1, TQ, D), 2)
               + 2 * nbytes((D, gw), 2) + 2 * nbytes((1, gw), 4)
               + nbytes((1, G, TQ, S), 4)) + nbytes((S, gw), 2)
    vmem_limit = int(min(max(2 * est, 32 * 1024 * 1024), 64 * 1024 * 1024))

    kernel = functools.partial(_extract_qk_kernel,
                               heads_per_group=G, head_dim=head_dim)

    return pl.pallas_call(
        kernel,
        out_shape=out_shape,
        grid_spec=pltpu.PrefetchScalarGridSpec(
            num_scalar_prefetch=0,
            grid=(B, n_groups, n_q),
            in_specs=[
                pl.BlockSpec((1, S, D), lambda b, g, t: (b, 0, 0)),   # hidden (full, for K)
                pl.BlockSpec((1, TQ, D), lambda b, g, t: (b, t, 0)),  # hidden (query tile)
                pl.BlockSpec((D, gw), lambda b, g, t: (0, g)),        # Wq head-group slice
                pl.BlockSpec((1, gw), lambda b, g, t: (0, g)),        # bq head-group slice
                pl.BlockSpec((D, gw), lambda b, g, t: (0, g)),        # Wk head-group slice
                pl.BlockSpec((1, gw), lambda b, g, t: (0, g)),        # bk head-group slice
            ],
            out_specs=pl.BlockSpec((1, G, TQ, S), lambda b, g, t: (b, g, t, 0)),
            scratch_shapes=[pltpu.VMEM((S, gw), jnp.bfloat16)],       # K for current group
        ),
        compiler_params=pltpu.CompilerParams(
            dimension_semantics=("parallel", "parallel", "arbitrary"),
            vmem_limit_bytes=vmem_limit),
    )(h16, h16, wq16, bq2, wk16, bk2)


def extract_qk_reference(hidden_states, wq, bq, wk, bk):
    """Pure-JAX reference mirroring the PyTorch forward (same bf16/f32 mixed precision)."""
    B, S, D = hidden_states.shape
    hd = D // N_HEAD
    h16 = hidden_states.astype(jnp.bfloat16)
    Q = jnp.dot(h16, wq.astype(jnp.bfloat16),
                preferred_element_type=jnp.float32) + bq
    K = jnp.dot(h16, wk.astype(jnp.bfloat16),
                preferred_element_type=jnp.float32) + bk
    Qh = Q.reshape(B, S, N_HEAD, hd).transpose(0, 2, 1, 3).astype(jnp.bfloat16)
    Kh = K.reshape(B, S, N_HEAD, hd).transpose(0, 2, 1, 3).astype(jnp.bfloat16)
    return jnp.einsum("bhqd,bhkd->bhqk", Qh, Kh,
                      preferred_element_type=jnp.float32)


if __name__ == "__main__":
    # Small shapes consistent with the module (d_model divisible by 12).
    # Note: at these tiny shapes every block equals the full array dims; real
    # performance behavior shows up at BERT shapes (S=512, D=768, head_dim=64).
    B, S, D = 2, 8, 96   # head_dim = 8

    key = jax.random.PRNGKey(0)
    k_h, k_wq, k_bq, k_wk, k_bk = jax.random.split(key, 5)

    hidden_states = jax.random.normal(k_h, (B, S, D), dtype=jnp.float32)
    # PyTorch nn.Linear stores W as [out, in]; we store pre-transposed [in, out].
    wq = jax.random.normal(k_wq, (D, D), dtype=jnp.float32) * 0.02
    bq = jax.random.normal(k_bq, (D,), dtype=jnp.float32) * 0.02
    wk = jax.random.normal(k_wk, (D, D), dtype=jnp.float32) * 0.02
    bk = jax.random.normal(k_bk, (D,), dtype=jnp.float32) * 0.02

    out = jax.block_until_ready(extract_qk(hidden_states, wq, bq, wk, bk))
    ref = extract_qk_reference(hidden_states, wq, bq, wk, bk)

    assert out.shape == (B, N_HEAD, S, S), out.shape
    assert jnp.allclose(out, ref, atol=2e-2, rtol=2e-2), \
        float(jnp.max(jnp.abs(out - ref)))

    print("KERNEL_OK")
</pallas_src>

<mosaic_0001>
module attributes {stable_mosaic.version = 11 : i64} {
  func.func @_extract_qk_kernel(%arg0: i32, %arg1: i32, %arg2: i32, %arg3: memref<1x8x96xbf16, #tpu.memory_space<vmem>>, %arg4: memref<1x8x96xbf16, #tpu.memory_space<vmem>>, %arg5: memref<96x96xbf16, #tpu.memory_space<vmem>>, %arg6: memref<1x96xf32, #tpu.memory_space<vmem>>, %arg7: memref<96x96xbf16, #tpu.memory_space<vmem>>, %arg8: memref<1x96xf32, #tpu.memory_space<vmem>>, %arg9: memref<1x12x8x8xf32, #tpu.memory_space<vmem>>, %arg10: memref<8x96xbf16, #tpu.memory_space<vmem>>) attributes {dimension_semantics = [#tpu.dimension_semantics<parallel>, #tpu.dimension_semantics<parallel>, #tpu.dimension_semantics<arbitrary>], iteration_bounds = array<i64: 2, 1, 1>, scalar_prefetch = 0 : i64, scratch_operands = 1 : i64, tpu.core_type = #tpu.core_type<tc>, window_params = [{transform_indices = @transform_0, window_bounds = array<i64: 1, 8, 96>}, {transform_indices = @transform_1, window_bounds = array<i64: 1, 8, 96>}, {transform_indices = @transform_2, window_bounds = array<i64: 96, 96>}, {transform_indices = @transform_3, window_bounds = array<i64: 1, 96>}, {transform_indices = @transform_4, window_bounds = array<i64: 96, 96>}, {transform_indices = @transform_5, window_bounds = array<i64: 1, 96>}, {transform_indices = @transform_6, window_bounds = array<i64: 1, 12, 8, 8>}]} {
    %c0_i32 = arith.constant 0 : i32
    %0 = arith.cmpi eq, %arg2, %c0_i32 : i32
    %1 = arith.extui %0 : i1 to i32
    %c0_i32_0 = arith.constant 0 : i32
    %2 = arith.cmpi ne, %1, %c0_i32_0 : i32
    scf.if %2 {
      %c0_58 = arith.constant 0 : index
      %c0_59 = arith.constant 0 : index
      %c0_60 = arith.constant 0 : index
      %84 = vector.load %arg3[%c0_58, %c0_59, %c0_60] : memref<1x8x96xbf16, #tpu.memory_space<vmem>>, vector<1x8x96xbf16>
      %85 = vector.shape_cast %84 : vector<1x8x96xbf16> to vector<8x96xbf16>
      %c0_61 = arith.constant 0 : index
      %c0_62 = arith.constant 0 : index
      %86 = vector.load %arg7[%c0_61, %c0_62] : memref<96x96xbf16, #tpu.memory_space<vmem>>, vector<96x96xbf16>
      %cst_63 = arith.constant dense<0.000000e+00> : vector<8x96xf32>
      %87 = tpu.matmul %85, %86, %cst_63 {dimension_numbers = #tpu.dot_dimension_numbers<[1], [0], [0], [1], [0, 0, 1, 1], [], []>} : vector<8x96xbf16>, vector<96x96xbf16>, vector<8x96xf32> -> vector<8x96xf32>
      %c0_64 = arith.constant 0 : index
      %c0_65 = arith.constant 0 : index
      %88 = vector.load %arg8[%c0_64, %c0_65] : memref<1x96xf32, #tpu.memory_space<vmem>>, vector<1x96xf32>
      %89 = vector.broadcast %88 : vector<1x96xf32> to vector<8x96xf32>
      %90 = arith.addf %87, %89 : vector<8x96xf32>
      %91 = arith.truncf %90 : vector<8x96xf32> to vector<8x96xbf16>
      %c0_66 = arith.constant 0 : index
      %c0_67 = arith.constant 0 : index
      %92 = vector.load %arg10[%c0_66, %c0_67] : memref<8x96xbf16, #tpu.memory_space<vmem>>, vector<8x96xbf16>
      tpu.vector_store %arg10[%c0_66, %c0_67], %91 {strides = array<i32>} : memref<8x96xbf16, #tpu.memory_space<vmem>>, vector<8x96xbf16>,
    } else {
    }
    %c0 = arith.constant 0 : index
    %c0_1 = arith.constant 0 : index
    %c0_2 = arith.constant 0 : index
    %3 = vector.load %arg4[%c0, %c0_1, %c0_2] : memref<1x8x96xbf16, #tpu.memory_space<vmem>>, vector<1x8x96xbf16>
    %4 = vector.shape_cast %3 : vector<1x8x96xbf16> to vector<8x96xbf16>
    %c0_3 = arith.constant 0 : index
    %c0_4 = arith.constant 0 : index
    %5 = vector.load %arg5[%c0_3, %c0_4] : memref<96x96xbf16, #tpu.memory_space<vmem>>, vector<96x96xbf16>
    %cst = arith.constant dense<0.000000e+00> : vector<8x96xf32>
    %6 = tpu.matmul %4, %5, %cst {dimension_numbers = #tpu.dot_dimension_numbers<[1], [0], [0], [1], [0, 0, 1, 1], [], []>} : vector<8x96xbf16>, vector<96x96xbf16>, vector<8x96xf32> -> vector<8x96xf32>
    %c0_5 = arith.constant 0 : index
    %c0_6 = arith.constant 0 : index
    %7 = vector.load %arg6[%c0_5, %c0_6] : memref<1x96xf32, #tpu.memory_space<vmem>>, vector<1x96xf32>
    %8 = vector.broadcast %7 : vector<1x96xf32> to vector<8x96xf32>
    %9 = arith.addf %6, %8 : vector<8x96xf32>
    %10 = arith.truncf %9 : vector<8x96xf32> to vector<8x96xbf16>
    %c0_7 = arith.constant 0 : index
    %c0_8 = arith.constant 0 : index
    %11 = vector.load %arg10[%c0_7, %c0_8] : memref<8x96xbf16, #tpu.memory_space<vmem>>, vector<8x96xbf16>
    %12 = vector.extract_strided_slice %10 {offsets = [0, 0], sizes = [8, 8], strides = [1, 1]} : vector<8x96xbf16> to vector<8x8xbf16>
    %13 = vector.extract_strided_slice %11 {offsets = [0, 0], sizes = [8, 8], strides = [1, 1]} : vector<8x96xbf16> to vector<8x8xbf16>
    %cst_9 = arith.constant dense<0.000000e+00> : vector<8x8xf32>
    %14 = tpu.matmul %12, %13, %cst_9 {dimension_numbers = #tpu.dot_dimension_numbers<[1], [1], [0], [0], [0, 0, 1, 0], [], []>} : vector<8x8xbf16>, vector<8x8xbf16>, vector<8x8xf32> -> vector<8x8xf32>
    %c0_10 = arith.constant 0 : index
    %c0_11 = arith.constant 0 : index
    %c0_12 = arith.constant 0 : index
    %c0_13 = arith.constant 0 : index
    %15 = vector.load %arg9[%c0_10, %c0_11, %c0_12, %c0_13] : memref<1x12x8x8xf32, #tpu.memory_space<vmem>>, vector<1x1x8x8xf32>
    %16 = vector.shape_cast %15 : vector<1x1x8x8xf32> to vector<8x8xf32>
    %17 = vector.shape_cast %14 : vector<8x8xf32> to vector<1x1x8x8xf32>
    tpu.vector_store %arg9[%c0_10, %c0_11, %c0_12, %c0_13], %17 {strides = array<i32>} : memref<1x12x8x8xf32, #tpu.memory_space<vmem>>, vector<1x1x8x8xf32>,
    %18 = vector.extract_strided_slice %10 {offsets = [0, 8], sizes = [8, 8], strides = [1, 1]} : vector<8x96xbf16> to vector<8x8xbf16>
    %19 = vector.extract_strided_slice %11 {offsets = [0, 8], sizes = [8, 8], strides = [1, 1]} : vector<8x96xbf16> to vector<8x8xbf16>
    %cst_14 = arith.constant dense<0.000000e+00> : vector<8x8xf32>
    %20 = tpu.matmul %18, %19, %cst_14 {dimension_numbers = #tpu.dot_dimension_numbers<[1], [1], [0], [0], [0, 0, 1, 0], [], []>} : vector<8x8xbf16>, vector<8x8xbf16>, vector<8x8xf32> -> vector<8x8xf32>
    %c0_15 = arith.constant 0 : index
    %c1 = arith.constant 1 : index
    %c0_16 = arith.constant 0 : index
    %c0_17 = arith.constant 0 : index
    %21 = vector.load %arg9[%c0_15, %c1, %c0_16, %c0_17] : memref<1x12x8x8xf32, #tpu.memory_space<vmem>>, vector<1x1x8x8xf32>
    %22 = vector.shape_cast %21 : vector<1x1x8x8xf32> to vector<8x8xf32>
    %23 = vector.shape_cast %20 : vector<8x8xf32> to vector<1x1x8x8xf32>
    tpu.vector_store %arg9[%c0_15, %c1, %c0_16, %c0_17], %23 {strides = array<i32>} : memref<1x12x8x8xf32, #tpu.memory_space<vmem>>, vector<1x1x8x8xf32>,
    %24 = vector.extract_strided_slice %10 {offsets = [0, 16], sizes = [8, 8], strides = [1, 1]} : vector<8x96xbf16> to vector<8x8xbf16>
    %25 = vector.extract_strided_slice %11 {offsets = [0, 16], sizes = [8, 8], strides = [1, 1]} : vector<8x96xbf16> to vector<8x8xbf16>
    %cst_18 = arith.constant dense<0.000000e+00> : vector<8x8xf32>
    %26 = tpu.matmul %24, %25, %cst_18 {dimension_numbers = #tpu.dot_dimension_numbers<[1], [1], [0], [0], [0, 0, 1, 0], [], []>} : vector<8x8xbf16>, vector<8x8xbf16>, vector<8x8xf32> -> vector<8x8xf32>
    %c0_19 = arith.constant 0 : index
    %c2 = arith.constant 2 : index
    %c0_20 = arith.constant 0 : index
    %c0_21 = arith.constant 0 : index
    %27 = vector.load %arg9[%c0_19, %c2, %c0_20, %c0_21] : memref<1x12x8x8xf32, #tpu.memory_space<vmem>>, vector<1x1x8x8xf32>
    %28 = vector.shape_cast %27 : vector<1x1x8x8xf32> to vector<8x8xf32>
    %29 = vector.shape_cast %26 : vector<8x8xf32> to vector<1x1x8x8xf32>
    tpu.vector_store %arg9[%c0_19, %c2, %c0_20, %c0_21], %29 {strides = array<i32>} : memref<1x12x8x8xf32, #tpu.memory_space<vmem>>, vector<1x1x8x8xf32>,
    %30 = vector.extract_strided_slice %10 {offsets = [0, 24], sizes = [8, 8], strides = [1, 1]} : vector<8x96xbf16> to vector<8x8xbf16>
    %31 = vector.extract_strided_slice %11 {offsets = [0, 24], sizes = [8, 8], strides = [1, 1]} : vector<8x96xbf16> to vector<8x8xbf16>
    %cst_22 = arith.constant dense<0.000000e+00> : vector<8x8xf32>
    %32 = tpu.matmul %30, %31, %cst_22 {dimension_numbers = #tpu.dot_dimension_numbers<[1], [1], [0], [0], [0, 0, 1, 0], [], []>} : vector<8x8xbf16>, vector<8x8xbf16>, vector<8x8xf32> -> vector<8x8xf32>
    %c0_23 = arith.constant 0 : index
    %c3 = arith.constant 3 : index
    %c0_24 = arith.constant 0 : index
    %c0_25 = arith.constant 0 : index
    %33 = vector.load %arg9[%c0_23, %c3, %c0_24, %c0_25] : memref<1x12x8x8xf32, #tpu.memory_space<vmem>>, vector<1x1x8x8xf32>
    %34 = vector.shape_cast %33 : vector<1x1x8x8xf32> to vector<8x8xf32>
    %35 = vector.shape_cast %32 : vector<8x8xf32> to vector<1x1x8x8xf32>
    tpu.vector_store %arg9[%c0_23, %c3, %c0_24, %c0_25], %35 {strides = array<i32>} : memref<1x12x8x8xf32, #tpu.memory_space<vmem>>, vector<1x1x8x8xf32>,
    %36 = vector.extract_strided_slice %10 {offsets = [0, 32], sizes = [8, 8], strides = [1, 1]} : vector<8x96xbf16> to vector<8x8xbf16>
    %37 = vector.extract_strided_slice %11 {offsets = [0, 32], sizes = [8, 8], strides = [1, 1]} : vector<8x96xbf16> to vector<8x8xbf16>
    %cst_26 = arith.constant dense<0.000000e+00> : vector<8x8xf32>
    %38 = tpu.matmul %36, %37, %cst_26 {dimension_numbers = #tpu.dot_dimension_numbers<[1], [1], [0], [0], [0, 0, 1, 0], [], []>} : vector<8x8xbf16>, vector<8x8xbf16>, vector<8x8xf32> -> vector<8x8xf32>
    %c0_27 = arith.constant 0 : index
    %c4 = arith.constant 4 : index
    %c0_28 = arith.constant 0 : index
    %c0_29 = arith.constant 0 : index
    %39 = vector.load %arg9[%c0_27, %c4, %c0_28, %c0_29] : memref<1x12x8x8xf32, #tpu.memory_space<vmem>>, vector<1x1x8x8xf32>
    %40 = vector.shape_cast %39 : vector<1x1x8x8xf32> to vector<8x8xf32>
    %41 = vector.shape_cast %38 : vector<8x8xf32> to vector<1x1x8x8xf32>
    tpu.vector_store %arg9[%c0_27, %c4, %c0_28, %c0_29], %41 {strides = array<i32>} : memref<1x12x8x8xf32, #tpu.memory_space<vmem>>, vector<1x1x8x8xf32>,
    %42 = vector.extract_strided_slice %10 {offsets = [0, 40], sizes = [8, 8], strides = [1, 1]} : vector<8x96xbf16> to vector<8x8xbf16>
    %43 = vector.extract_strided_slice %11 {offsets = [0, 40], sizes = [8, 8], strides = [1, 1]} : vector<8x96xbf16> to vector<8x8xbf16>
    %cst_30 = arith.constant dense<0.000000e+00> : vector<8x8xf32>
    %44 = tpu.matmul %42, %43, %cst_30 {dimension_numbers = #tpu.dot_dimension_numbers<[1], [1], [0], [0], [0, 0, 1, 0], [], []>} : vector<8x8xbf16>, vector<8x8xbf16>, vector<8x8xf32> -> vector<8x8xf32>
    %c0_31 = arith.constant 0 : index
    %c5 = arith.constant 5 : index
    %c0_32 = arith.constant 0 : index
    %c0_33 = arith.constant 0 : index
    %45 = vector.load %arg9[%c0_31, %c5, %c0_32, %c0_33] : memref<1x12x8x8xf32, #tpu.memory_space<vmem>>, vector<1x1x8x8xf32>
    %46 = vector.shape_cast %45 : vector<1x1x8x8xf32> to vector<8x8xf32>
    %47 = vector.shape_cast %44 : vector<8x8xf32> to vector<1x1x8x8xf32>
    tpu.vector_store %arg9[%c0_31, %c5, %c0_32, %c0_33], %47 {strides = array<i32>} : memref<1x12x8x8xf32, #tpu.memory_space<vmem>>, vector<1x1x8x8xf32>,
    %48 = vector.extract_strided_slice %10 {offsets = [0, 48], sizes = [8, 8], strides = [1, 1]} : vector<8x96xbf16> to vector<8x8xbf16>
    %49 = vector.extract_strided_slice %11 {offsets = [0, 48], sizes = [8, 8], strides = [1, 1]} : vector<8x96xbf16> to vector<8x8xbf16>
    %cst_34 = arith.constant dense<0.000000e+00> : vector<8x8xf32>
    %50 = tpu.matmul %48, %49, %cst_34 {dimension_numbers = #tpu.dot_dimension_numbers<[1], [1], [0], [0], [0, 0, 1, 0], [], []>} : vector<8x8xbf16>, vector<8x8xbf16>, vector<8x8xf32> -> vector<8x8xf32>
    %c0_35 = arith.constant 0 : index
    %c6 = arith.constant 6 : index
    %c0_36 = arith.constant 0 : index
    %c0_37 = arith.constant 0 : index
    %51 = vector.load %arg9[%c0_35, %c6, %c0_36, %c0_37] : memref<1x12x8x8xf32, #tpu.memory_space<vmem>>, vector<1x1x8x8xf32>
    %52 = vector.shape_cast %51 : vector<1x1x8x8xf32> to vector<8x8xf32>
    %53 = vector.shape_cast %50 : vector<8x8xf32> to vector<1x1x8x8xf32>
    tpu.vector_store %arg9[%c0_35, %c6, %c0_36, %c0_37], %53 {strides = array<i32>} : memref<1x12x8x8xf32, #tpu.memory_space<vmem>>, vector<1x1x8x8xf32>,
    %54 = vector.extract_strided_slice %10 {offsets = [0, 56], sizes = [8, 8], strides = [1, 1]} : vector<8x96xbf16> to vector<8x8xbf16>
    %55 = vector.extract_strided_slice %11 {offsets = [0, 56], sizes = [8, 8], strides = [1, 1]} : vector<8x96xbf16> to vector<8x8xbf16>
    %cst_38 = arith.constant dense<0.000000e+00> : vector<8x8xf32>
    %56 = tpu.matmul %54, %55, %cst_38 {dimension_numbers = #tpu.dot_dimension_numbers<[1], [1], [0], [0], [0, 0, 1, 0], [], []>} : vector<8x8xbf16>, vector<8x8xbf16>, vector<8x8xf32> -> vector<8x8xf32>
    %c0_39 = arith.constant 0 : index
    %c7 = arith.constant 7 : index
    %c0_40 = arith.constant 0 : index
    %c0_41 = arith.constant 0 : index
    %57 = vector.load %arg9[%c0_39, %c7, %c0_40, %c0_41] : memref<1x12x8x8xf32, #tpu.memory_space<vmem>>, vector<1x1x8x8xf32>
    %58 = vector.shape_cast %57 : vector<1x1x8x8xf32> to vector<8x8xf32>
    %59 = vector.shape_cast %56 : vector<8x8xf32> to vector<1x1x8x8xf32>
    tpu.vector_store %arg9[%c0_39, %c7, %c0_40, %c0_41], %59 {strides = array<i32>} : memref<1x12x8x8xf32, #tpu.memory_space<vmem>>, vector<1x1x8x8xf32>,
    %60 = vector.extract_strided_slice %10 {offsets = [0, 64], sizes = [8, 8], strides = [1, 1]} : vector<8x96xbf16> to vector<8x8xbf16>
    %61 = vector.extract_strided_slice %11 {offsets = [0, 64], sizes = [8, 8], strides = [1, 1]} : vector<8x96xbf16> to vector<8x8xbf16>
    %cst_42 = arith.constant dense<0.000000e+00> : vector<8x8xf32>
    %62 = tpu.matmul %60, %61, %cst_42 {dimension_numbers = #tpu.dot_dimension_numbers<[1], [1], [0], [0], [0, 0, 1, 0], [], []>} : vector<8x8xbf16>, vector<8x8xbf16>, vector<8x8xf32> -> vector<8x8xf32>
    %c0_43 = arith.constant 0 : index
    %c8 = arith.constant 8 : index
    %c0_44 = arith.constant 0 : index
    %c0_45 = arith.constant 0 : index
    %63 = vector.load %arg9[%c0_43, %c8, %c0_44, %c0_45] : memref<1x12x8x8xf32, #tpu.memory_space<vmem>>, vector<1x1x8x8xf32>
    %64 = vector.shape_cast %63 : vector<1x1x8x8xf32> to vector<8x8xf32>
    %65 = vector.shape_cast %62 : vector<8x8xf32> to vector<1x1x8x8xf32>
    tpu.vector_store %arg9[%c0_43, %c8, %c0_44, %c0_45], %65 {strides = array<i32>} : memref<1x12x8x8xf32, #tpu.memory_space<vmem>>, vector<1x1x8x8xf32>,
    %66 = vector.extract_strided_slice %10 {offsets = [0, 72], sizes = [8, 8], strides = [1, 1]} : vector<8x96xbf16> to vector<8x8xbf16>
    %67 = vector.extract_strided_slice %11 {offsets = [0, 72], sizes = [8, 8], strides = [1, 1]} : vector<8x96xbf16> to vector<8x8xbf16>
    %cst_46 = arith.constant dense<0.000000e+00> : vector<8x8xf32>
    %68 = tpu.matmul %66, %67, %cst_46 {dimension_numbers = #tpu.dot_dimension_numbers<[1], [1], [0], [0], [0, 0, 1, 0], [], []>} : vector<8x8xbf16>, vector<8x8xbf16>, vector<8x8xf32> -> vector<8x8xf32>
    %c0_47 = arith.constant 0 : index
    %c9 = arith.constant 9 : index
    %c0_48 = arith.constant 0 : index
    %c0_49 = arith.constant 0 : index
    %69 = vector.load %arg9[%c0_47, %c9, %c0_48, %c0_49] : memref<1x12x8x8xf32, #tpu.memory_space<vmem>>, vector<1x1x8x8xf32>
    %70 = vector.shape_cast %69 : vector<1x1x8x8xf32> to vector<8x8xf32>
    %71 = vector.shape_cast %68 : vector<8x8xf32> to vector<1x1x8x8xf32>
    tpu.vector_store %arg9[%c0_47, %c9, %c0_48, %c0_49], %71 {strides = array<i32>} : memref<1x12x8x8xf32, #tpu.memory_space<vmem>>, vector<1x1x8x8xf32>,
    %72 = vector.extract_strided_slice %10 {offsets = [0, 80], sizes = [8, 8], strides = [1, 1]} : vector<8x96xbf16> to vector<8x8xbf16>
    %73 = vector.extract_strided_slice %11 {offsets = [0, 80], sizes = [8, 8], strides = [1, 1]} : vector<8x96xbf16> to vector<8x8xbf16>
    %cst_50 = arith.constant dense<0.000000e+00> : vector<8x8xf32>
    %74 = tpu.matmul %72, %73, %cst_50 {dimension_numbers = #tpu.dot_dimension_numbers<[1], [1], [0], [0], [0, 0, 1, 0], [], []>} : vector<8x8xbf16>, vector<8x8xbf16>, vector<8x8xf32> -> vector<8x8xf32>
    %c0_51 = arith.constant 0 : index
    %c10 = arith.constant 10 : index
    %c0_52 = arith.constant 0 : index
    %c0_53 = arith.constant 0 : index
    %75 = vector.load %arg9[%c0_51, %c10, %c0_52, %c0_53] : memref<1x12x8x8xf32, #tpu.memory_space<vmem>>, vector<1x1x8x8xf32>
    %76 = vector.shape_cast %75 : vector<1x1x8x8xf32> to vector<8x8xf32>
    %77 = vector.shape_cast %74 : vector<8x8xf32> to vector<1x1x8x8xf32>
    tpu.vector_store %arg9[%c0_51, %c10, %c0_52, %c0_53], %77 {strides = array<i32>} : memref<1x12x8x8xf32, #tpu.memory_space<vmem>>, vector<1x1x8x8xf32>,
    %78 = vector.extract_strided_slice %10 {offsets = [0, 88], sizes = [8, 8], strides = [1, 1]} : vector<8x96xbf16> to vector<8x8xbf16>
    %79 = vector.extract_strided_slice %11 {offsets = [0, 88], sizes = [8, 8], strides = [1, 1]} : vector<8x96xbf16> to vector<8x8xbf16>
    %cst_54 = arith.constant dense<0.000000e+00> : vector<8x8xf32>
    %80 = tpu.matmul %78, %79, %cst_54 {dimension_numbers = #tpu.dot_dimension_numbers<[1], [1], [0], [0], [0, 0, 1, 0], [], []>} : vector<8x8xbf16>, vector<8x8xbf16>, vector<8x8xf32> -> vector<8x8xf32>
    %c0_55 = arith.constant 0 : index
    %c11 = arith.constant 11 : index
    %c0_56 = arith.constant 0 : index
    %c0_57 = arith.constant 0 : index
    %81 = vector.load %arg9[%c0_55, %c11, %c0_56, %c0_57] : memref<1x12x8x8xf32, #tpu.memory_space<vmem>>, vector<1x1x8x8xf32>
    %82 = vector.shape_cast %81 : vector<1x1x8x8xf32> to vector<8x8xf32>
    %83 = vector.shape_cast %80 : vector<8x8xf32> to vector<1x1x8x8xf32>
    tpu.vector_store %arg9[%c0_55, %c11, %c0_56, %c0_57], %83 {strides = array<i32>} : memref<1x12x8x8xf32, #tpu.memory_space<vmem>>, vector<1x1x8x8xf32>,
    return
  }
  func.func @transform_0(%arg0: i32, %arg1: i32, %arg2: i32) -> (i32, i32, i32) {
    %c0_i32 = arith.constant 0 : i32
    %c0_i32_0 = arith.constant 0 : i32
    %c0_i32_1 = arith.constant 0 : i32
    return %arg0, %c0_i32, %c0_i32_0 : i32, i32, i32
  }
  func.func @transform_1(%arg0: i32, %arg1: i32, %arg2: i32) -> (i32, i32, i32) {
    %c0_i32 = arith.constant 0 : i32
    %c0_i32_0 = arith.constant 0 : i32
    return %arg0, %arg2, %c0_i32 : i32, i32, i32
  }
  func.func @transform_2(%arg0: i32, %arg1: i32, %arg2: i32) -> (i32, i32) {
    %c0_i32 = arith.constant 0 : i32
    %c0_i32_0 = arith.constant 0 : i32
    return %c0_i32, %arg1 : i32, i32
  }
  func.func @transform_3(%arg0: i32, %arg1: i32, %arg2: i32) -> (i32, i32) {
    %c0_i32 = arith.constant 0 : i32
    %c0_i32_0 = arith.constant 0 : i32
    return %c0_i32, %arg1 : i32, i32
  }
  func.func @transform_4(%arg0: i32, %arg1: i32, %arg2: i32) -> (i32, i32) {
    %c0_i32 = arith.constant 0 : i32
    %c0_i32_0 = arith.constant 0 : i32
    return %c0_i32, %arg1 : i32, i32
  }
  func.func @transform_5(%arg0: i32, %arg1: i32, %arg2: i32) -> (i32, i32) {
    %c0_i32 = arith.constant 0 : i32
    %c0_i32_0 = arith.constant 0 : i32
    return %c0_i32, %arg1 : i32, i32
  }
  func.func @transform_6(%arg0: i32, %arg1: i32, %arg2: i32) -> (i32, i32, i32, i32) {
    %c0_i32 = arith.constant 0 : i32
    %c0_i32_0 = arith.constant 0 : i32
    return %arg0, %arg1, %arg2, %c0_i32 : i32, i32, i32, i32
  }
}

</mosaic_0001>

<bundles_post_ra>
// kernel: tpu_custom_call.1
= control target key start
LH: loop header
LB: loop body
LE: loop exit
PB: predicated region body
PF: predicated region fallthrough
CT: control target
= control target key end

     0   :  { %s2323_s0 = inlined_call_operand.hbm [shape: bf16[2,8,96], index: 0, kind: input, shape index: {}]   ;;  %s2324_s1 = inlined_call_operand.hbm [shape: bf16[2,8,96], index: 1, kind: input, shape index: {}]   ;;  %s2325_s2 = inlined_call_operand.hbm [shape: bf16[96,96], index: 2, kind: input, shape index: {}]   ;;  %s2326_s3 = inlined_call_operand.vmem [shape: f32[1,96], index: 3, kind: input, shape index: {}]   ;;  %s2327_s4 = inlined_call_operand.hbm [shape: bf16[96,96], index: 4, kind: input, shape index: {}]   ;;  %s2328_s5 = inlined_call_operand.vmem [shape: f32[1,96], index: 5, kind: input, shape index: {}]   ;;  %s2329_s6 = inlined_call_operand.vmem [shape: f32[2,12,8,8], index: 6, kind: output, shape index: {}]  }
   0x1   :  { %2335 = sst [smem:[#allocation14_spill]] %s2325_s2 }
   0x2   :  { %2336 = sst [smem:[#allocation15_spill]] %s2327_s4 }
   0x3   :  { %11 = vsyncpa [#allocation4], 0 }
   0x4   :  { %13 = vsyncpa [#allocation4 + $0x1], 0 }
   0x5   :  { %14 = vsyncpa [#allocation6], 0 }
   0x6   :  { %16 = vsyncpa [#allocation6 + $0x1], 0 }
   0x7   :  { %17 = vsyncpa [#allocation9], 0  ;;  %s1974_s21 = smov 0   ;;  %s1976_s22 = smov 0  }
   0x8   :  { %s1978_s23 = smov 0   ;;  %s1980_s24 = smov 0  }
   0x9   :  { %s1982_s25 = smov 0   ;;  %s1984_s26 = smov 0  }
   0xa LB: > { %s2334_s27 = sadd.s32 4294967295, %s1918_s26   ;;  %p62_p0 = scmp.ne.s32.totalorder %s1902_s22, %s1898_s21  ;;  %s1918_s26 = sphi %s1984_s26, %s23_s26   ;;  %s1914_s25 = sphi %s1982_s25, %s2352_s25   ;;  %s1910_s24 = sphi %s1980_s24, %s2351_s24   ;;  %s1906_s23 = sphi %s1978_s23, %s2350_s23   ;;  %s1902_s22 = sphi %s1976_s22, %s2349_s22   ;;  %s1898_s21 = sphi %s1974_s21, %s2348_s21  }
   0xb   : > { %p2006_p1 = scmp.eq.s32.totalorder %s2334_s27, 0  ;;  %p1430_p2 = scmp.ge.s32.totalorder %s1918_s26, 1 }
   0xc   : > { %p235_p3 = scmp.lt.s32.totalorder %s1918_s26, 3  ;;  %s1920_s7 = smov [#allocation7]  }
   0xd   : > { %s2337_s28 = scalar_select %p2006_p1, 1, 0 }
   0xe   : > { %p2014_p4 = por %p2006_p1, %p62_p0  ;;  %p2018_p5 = pnand %p1430_p2, %p235_p3 }
   0xf   : > { %s249_s8 = sshll.u32 %s1920_s7, 4  ;;  %s1921_s10 = smov [#allocation8]   ;;  %s250_s8 = int_to_ptr.vmem [resolvable:$true] %s249_s8 }
  0x10   : > { %s2338_s29 = scalar_select %p2014_p4, 1, 0 }
  0x11   : > { %s2339_s30 = scalar_select %p2018_p5, 1, 0 }
  0x12   : > { %p1643_p6 = pneg %p2018_p5  ;;  %s270_s11 = sshll.u32 %s1921_s10, 4  ;;  %s2030_s11 = int_to_ptr.vmem [resolvable:$true] %s270_s11 }
  0x13   : > { %s2341_s2 = sld [smem:[#allocation14_spill]] }
  0x14   : > { %p2026_p7 = pnand %p1643_p6, %p2006_p1 }
  0x16   : > { %p1742_p9 = pneg %p2026_p7 }
  0x19   : > { %s1740_s14 = scalar_lea.hbm %s2341_s2, 768 }
  0x1a   : > { %p1741_p8 = scmp.ne.s32.totalorder %s2341_s2, %s1740_s14  ;;  %p1747_p12 = scmp.lt.u32.totalorder %s1740_s14, %s2341_s2 }
  0x1c   : > { %p1743_p10 = pnand %p1742_p9, %p1741_p8 }
  0x1e   : > { %p1744_p11 = pneg %p1743_p10 }
  0x20   : > { %p1749_p13 = pnand %p1747_p12, %p1744_p11 }
  0x22   : > { %1752 = shalt.err (!%p1749_p13)
}
  0x23   : > { %s1753_s19 = scalar_lea.vmem %s250_s8, 768  ;;  %p1761_p6 = scmp.lt.s32.totalorder %s250_s8, %s250_s8 }
  0x24   : > { %p1754_p0 = scmp.ne.s32.totalorder %s250_s8, %s1753_s19  ;;  %p1762_p1 = scmp.lt.s32.totalorder %s1753_s19, %s1753_s19 }
  0x26   : > { %p1756_p2 = pnand %p1754_p0, %p1742_p9  ;;  %p1763_p4 = por %p1762_p1, %p1761_p6 }
  0x28   : > { %p1757_p3 = pneg %p1756_p2 }
  0x2a   : > { %p1764_p5 = pnand %p1763_p4, %p1757_p3 }
  0x2c   : > { %1767 = shalt.err (!%p1764_p5)
}
  0x2d   : > { %s1922_s20 = smov 64   ;;  %s1923_s21 = smov 4  }
  0x2e   : > { %1646 = dma.hbm_to_vmem [thread:$0]  (!%p2026_p7), %s2341_s2, 768, %s250_s8, [#allocation6], %s1922_s20, %s1922_s20, %s1923_s21  }
  0x2f   : > { %s2342_s4 = sld [smem:[#allocation15_spill]] }
  0x35   : > { %s1768_s14 = scalar_lea.hbm %s2342_s4, 768 }
  0x36   : > { %p1769_p8 = scmp.ne.s32.totalorder %s2342_s4, %s1768_s14  ;;  %p1775_p5 = scmp.lt.u32.totalorder %s1768_s14, %s2342_s4 }
  0x38   : > { %p1771_p1 = pnand %p1769_p8, %p1742_p9 }
  0x3a   : > { %p1772_p4 = pneg %p1771_p1 }
  0x3c   : > { %p1777_p10 = pnand %p1775_p5, %p1772_p4 }
  0x3e   : > { %1780 = shalt.err (!%p1777_p10)
}
  0x3f   : > { %s1781_s8 = scalar_lea.vmem %s2030_s11, 768  ;;  %p1789_p0 = scmp.lt.s32.totalorder %s2030_s11, %s2030_s11 }
  0x40   : > { %p1782_p11 = scmp.ne.s32.totalorder %s2030_s11, %s1781_s8  ;;  %p1790_p2 = scmp.lt.s32.totalorder %s1781_s8, %s1781_s8 }
  0x42   : > { %p1784_p12 = pnand %p1782_p11, %p1742_p9  ;;  %p1791_p3 = por %p1790_p2, %p1789_p0 }
  0x44   : > { %p1785_p13 = pneg %p1784_p12 }
  0x46   : > { %p1792_p6 = pnand %p1791_p3, %p1785_p13 }
  0x48   : > { %1795 = shalt.err (!%p1792_p6)
}
  0x49   : > { %1649 = dma.hbm_to_vmem [thread:$0]  (!%p2026_p7), %s2342_s4, 768, %s2030_s11, [#allocation9], %s1922_s20, %s1922_s20, %s1923_s21  }
  0x4a   : > { %s42_s10 = sadd.s32 1, %s1914_s25  ;;  %s49_s12 = sadd.s32 1, %s1906_s23 }
  0x4b   : > { %p44_p9 = scmp.ge.s32.totalorder %s42_s10, 2  ;;  %p56_p8 = scmp.ne.s32.totalorder %s1906_s23, %s1902_s22 }
  0x4c   : > { %p57_p1 = scmp.eq.s32.totalorder %s1918_s26, 0  ;;  %p1659_p4 = scmp.lt.s32.totalorder %s1918_s26, 2 }
  0x4d   : > { %s2354_s10 = smov (%p44_p9, %s42_s10), 0  ;;  %s290_s9 = sand.u32 1, %s1906_s23  }
  0x4e   : > { %p58_p5 = por %p57_p1, %p56_p8  ;;  %s46_s13 = ssub.s32 %s1914_s25, %s2354_s10 }
  0x4f   : > { %p47_p10 = scmp.eq.s32.totalorder %s46_s13, 0  ;;  %s2090_s14 = sshll.u32 %s290_s9, 2 }
  0x50   : > { %s1437_s15 = sshll.u32 %s1914_s25, 6  ;;  %s294_s17 = scalar_lea.vmem [#allocation3], %s2090_s14 }
  0x51   : > { %s2094_s11 = scalar_select %p47_p10, %s1906_s23, %s49_s12  }
  0x52   : > { %s2099_s16 = scalar_lea.hbm %s2323_s0, %s1437_s15  ;;  %s301_s18 = sshll.u32 %s294_s17, 4  ;;  %s2102_s18 = int_to_ptr.vmem [resolvable:$true] %s301_s18 }
  0x53   : > { %p2106_p7 = pnand %p1659_p4, %p58_p5  ;;  %s2113_s12 = scalar_lea.hbm %s2324_s1, %s1437_s15 }
  0x54   : > { %s308_s13 = sand.u32 1, %s1918_s26   ;;  %s291_s20 = scalar_lea.sflag [#allocation4], %s290_s9 }
  0x55   : > { %s1796_s21 = scalar_lea.hbm %s2099_s16, 64  ;;  %p1798_p12 = pneg %p2106_p7 }
  0x56   : > { %p1797_p11 = scmp.ne.s32.totalorder %s2099_s16, %s1796_s21  ;;  %s1801_s2 = scalar_lea.hbm %s2323_s0, 128 }
  0x57   : > { %p1802_p2 = scmp.lt.u32.totalorder %s2099_s16, %s2323_s0  ;;  %p1803_p3 = scmp.lt.u32.totalorder %s1801_s2, %s1796_s21 }
  0x58   : > { %p1799_p13 = pnand %p1798_p12, %p1797_p11  ;;  %p1805_p9 = scmp.lt.u32.totalorder %s1796_s21, %s2099_s16 }
  0x59   : > { %p1804_p6 = por %p1803_p3, %p1802_p2 }
  0x5a   : > { %p1800_p0 = pneg %p1799_p13 }
  0x5b   : > { %p1806_p8 = por %p1805_p9, %p1804_p6 }
  0x5d   : > { %p1807_p1 = pnand %p1806_p8, %p1800_p0 }
  0x5f   : > { %1810 = shalt.err (!%p1807_p1)
}
  0x60   : > { %s1811_s9 = scalar_lea.vmem %s2102_s18, 64  ;;  %s1924_s27 = smov [#allocation3]  }
  0x61   : > { %p1812_p4 = scmp.ne.s32.totalorder %s2102_s18, %s1811_s9  ;;  %s1816_s15 = sshll.u32 %s1924_s27, 4  ;;  %s1817_s15 = int_to_ptr.vmem [resolvable:$false] %s1816_s15 }
  0x62   : > { %s1818_s4 = scalar_lea.vmem %s1817_s15, 128  ;;  %p1819_p11 = scmp.lt.s32.totalorder %s2102_s18, %s1817_s15 }
  0x63   : > { %p1814_p5 = pnand %p1812_p4, %p1798_p12  ;;  %p1820_p13 = scmp.lt.s32.totalorder %s1818_s4, %s1811_s9 }
  0x65   : > { %p1815_p10 = pneg %p1814_p5  ;;  %p1821_p2 = por %p1820_p13, %p1819_p11 }
  0x67   : > { %p1822_p3 = pnand %p1821_p2, %p1815_p10 }
  0x69   : > { %1825 = shalt.err (!%p1822_p3)
}
  0x6a   : > { %1653 = dma.hbm_to_vmem [thread:$0]  (!%p2106_p7), %s2099_s16, 64, %s2102_s18, %s291_s20  }
  0x6b   : > { %s312_s2 = scalar_lea.vmem [#allocation5], %s2090_s14  ;;  %s309_s21 = scalar_lea.sflag [#allocation6], %s308_s13 }
  0x6c   : > { %s320_s7 = sshll.u32 %s312_s2, 4  ;;  %s1826_s17 = scalar_lea.hbm %s2113_s12, 64  ;;  %s321_s7 = int_to_ptr.vmem [resolvable:$true] %s320_s7 }
  0x6d   : > { %p1827_p0 = scmp.ne.s32.totalorder %s2113_s12, %s1826_s17  ;;  %s1831_s27 = scalar_lea.hbm %s2324_s1, 128 }
  0x6e   : > { %p1832_p8 = scmp.lt.u32.totalorder %s2113_s12, %s2324_s1  ;;  %p1833_p1 = scmp.lt.u32.totalorder %s1831_s27, %s1826_s17 }
  0x6f   : > { %p1829_p6 = pnand %p1827_p0, %p1798_p12  ;;  %p1835_p5 = scmp.lt.u32.totalorder %s1826_s17, %s2113_s12 }
  0x70   : > { %p1834_p4 = por %p1833_p1, %p1832_p8 }
  0x71   : > { %p1830_p9 = pneg %p1829_p6 }
  0x72   : > { %p1836_p10 = por %p1835_p5, %p1834_p4 }
  0x74   : > { %p1837_p11 = pnand %p1836_p10, %p1830_p9 }
  0x76   : > { %1840 = shalt.err (!%p1837_p11)
}
  0x77   : > { %s1841_s14 = scalar_lea.vmem %s321_s7, 64  ;;  %s1925_s16 = smov [#allocation5]  }
  0x78   : > { %p1842_p13 = scmp.ne.s32.totalorder %s321_s7, %s1841_s14  ;;  %s1846_s18 = sshll.u32 %s1925_s16, 4  ;;  %s1847_s18 = int_to_ptr.vmem [resolvable:$false] %s1846_s18 }
  0x79   : > { %s1848_s13 = scalar_lea.vmem %s1847_s18, 128  ;;  %p1849_p0 = scmp.lt.s32.totalorder %s321_s7, %s1847_s18 }
  0x7a   : > { %p1844_p2 = pnand %p1842_p13, %p1798_p12  ;;  %p1850_p6 = scmp.lt.s32.totalorder %s1848_s13, %s1841_s14 }
  0x7c   : > { %p1845_p3 = pneg %p1844_p2  ;;  %p1851_p1 = por %p1850_p6, %p1849_p0 }
  0x7e   : > { %p1852_p8 = pnand %p1851_p1, %p1845_p3 }
  0x80   : > { %1855 = shalt.err (!%p1852_p8)
}
  0x81   : > { %1656 = dma.hbm_to_vmem [thread:$0]  (!%p2106_p7), %s2113_s12, 64, %s321_s7, %s309_s21  }
  0x82   : > { %p2344_p9 = scmp.ne.s32.totalorder %s2339_s30, 0 }
  0x83   : > { %s331_s20 = sand.u32 (!%p2344_p9), 1, %s1902_s22   ;;  %p2345_p12 = scmp.ne.s32.totalorder (!%p2344_p9), %s2338_s29, 0 }
  0x84   : > { %329 = sbr.rel (%p2344_p9) target bundleno = 779 (0x30b), region = 44  ;;  %s2166_s2 = sshll.u32 (!%p2344_p9), %s331_s20, 2 }
  0x85   : > { %s332_s17 = scalar_lea.sflag (!%p2344_p9), [#allocation4], %s331_s20  ;;  %s335_s19 = scalar_lea.vmem (!%p2344_p9), [#allocation3], %s2166_s2 }
  0x8b   : > { %1881 = dma.done.wait (%p2345_p12), %s332_s17, 64  }
  0x8c   : > { %1883 = vsyncadd (%p2345_p12), %s332_s17, 4294967232  ;;  %s2346_s8 = sadd.s32 4294967295, %s1918_s26   ;;  %s344_s7 = scalar_lea.vmem [#allocation5], %s2166_s2 }
  0x8d   : > { %s340_s12 = sand.u32 1, %s2346_s8  }
  0x8e   : > { %s341_s30 = scalar_lea.sflag [#allocation6], %s340_s12 }
  0x8f   : > { %1885 = dma.done.wait (%p2345_p12), %s341_s30, 64  }
  0x90   : > { %1887 = vsyncadd (%p2345_p12), %s341_s30, 4294967232  ;;  %p2347_p7 = scmp.ne.s32.totalorder %s2337_s28, 0 }
  0x92   : > { %1889 = dma.done.wait (%p2347_p7), [#allocation6], 768  }
  0x93   : > { %1891 = vsyncadd (%p2347_p7), [#allocation6], 4294966528 }
  0x94   : > { %1893 = dma.done.wait (%p2347_p7), [#allocation9], 768  }
  0x95   : > { %1895 = vsyncadd (%p2347_p7), [#allocation9], 4294966528  ;;  %v1926_v0 = vmov 0.0   ;;  %vm1927_vm0 = vmmov 0   ;;  %v1727_v1 = vld [vmem:[#allocation8] sm:$0xff]   ;;  %v1728_v2 = vld [vmem:[#allocation8 + $0x8] sm:$0xff]  }
  0x96   : > { %1526 = vmatprep.subr.bf16.mxu0 %v1926_v0  ;;  %1542 = vmatprep.subr.bf16.mxu1 %v1926_v0  ;;  %v1731_v3 = vld [vmem:[#allocation7] sm:$0xff]   ;;  %v1733_v5 = vld [vmem:[#allocation7 + $0x8] sm:$0xff]   ;;  %v1735_v7 = vld [vmem:[#allocation7 + $0x10] sm:$0xff]   ;;  %vm479_vm1 = vcmask 785408   ;;  %vm524_vm2 = vcmask 781312   ;;  %vm628_vm3 = vcmask 64512  }
  0x97   : > { %1538 = vmatprep.mubr.msk.bf16.mxu0 %vm1927_vm0, %v1926_v0  ;;  %1554 = vmatprep.mubr.msk.bf16.mxu1 %vm1927_vm0, %v1926_v0  ;;  %v1729_v4 = vld [vmem:[#allocation8 + $0x10] sm:$0xff]   ;;  %v1730_v6 = vld [vmem:[#allocation8 + $0x18] sm:$0xff]   ;;  %v1732_v8 = vld [vmem:[#allocation8 + $0x20] sm:$0xff]   ;;  %s1928_s27 = smov 112   ;;  %s1929_s15 = smov 120  }
  0x98   : > { %1527 = vmatpush3.bf16.msra.mxu0 %v1727_v1  ;;  %1543 = vmatpush3.bf16.msra.mxu1 %v1731_v3  ;;  %v1736_v9 = vld [vmem:[#allocation7 + $0x18] sm:$0xff]   ;;  %v1737_v11 = vld [vmem:[#allocation7 + $0x20] sm:$0xff]   ;;  %v423_v12 = vld [vmem:[%s335_s19] sm:$0xf]  ;;  %s1930_s4 = smov 104   ;;  %s1931_s14 = smov 88  }
  0x99   : > { %1528 = vmatprep.subr.bf16.mxu0 %v1926_v0  ;;  %1544 = vmatprep.subr.bf16.mxu1 %v1926_v0  ;;  %v1734_v10 = vld [vmem:[#allocation8 + $0x28] sm:$0xff]   ;;  %v1738_v13 = vld [vmem:[#allocation7 + $0x28] sm:$0xff]   ;;  %s1932_s16 = smov 96   ;;  %s1933_s18 = smov 72  }
  0x9a   : > { %v526_v14 = vld [vmem:[%s344_s7] sm:$0xf]  ;;  %v1446_v15 = vld [vmem:[%s2328_s5] ss:$0 sm:$0xff]  ;;  %s1934_s13 = smov 80   ;;  %s1935_s20 = smov 56  }
  0x9b   : > { %v1454_v26 = vld [vmem:[%s2326_s3] ss:$0 sm:$0xff]  ;;  %s1936_s2 = smov 64   ;;  %s1937_s17 = smov 40  }
  0x9c   : > { %1529 = vmatpush3.bf16.msra.mxu0 %v1728_v2  ;;  %1545 = vmatpush3.bf16.msra.mxu1 %v1733_v5  ;;  %s1938_s19 = smov 48   ;;  %p406_p4 = scmp.lt.s32.totalorder %s1910_s24, 1 }
  0x9d   : > { %1530 = vmatprep.subr.bf16.mxu0 %v1926_v0  ;;  %1546 = vmatprep.subr.bf16.mxu1 %v1926_v0 }
  0x9e   : > { %s2356_s24 = smov (!%p406_p4, %s1910_s24), 1 }
  0x9f   : > { %s1630_s8 = smul.u32 96, %s2356_s24 }
  0xa0   : > { %1531 = vmatpush3.bf16.msra.mxu0 %v1729_v4  ;;  %1547 = vmatpush3.bf16.msra.mxu1 %v1735_v7 }
  0xa1   : > { %1532 = vmatprep.subr.bf16.mxu0 %v1926_v0  ;;  %1548 = vmatprep.subr.bf16.mxu1 %v1926_v0  ;;  %s2279_s7 = scalar_lea.vmem %s2329_s6, %s1630_s8 }
  0xa4   : > { %1533 = vmatpush3.bf16.msra.mxu0 %v1730_v6  ;;  %1549 = vmatpush3.bf16.msra.mxu1 %v1736_v9 }
  0xa5   : > { %1534 = vmatprep.subr.bf16.mxu0 %v1926_v0  ;;  %1550 = vmatprep.subr.bf16.mxu1 %v1926_v0 }
  0xa8   : > { %1535 = vmatpush3.bf16.msra.mxu0 %v1732_v8  ;;  %1551 = vmatpush3.bf16.msra.mxu1 %v1737_v11 }
  0xa9   : > { %1536 = vmatprep.subr.bf16.mxu0 %v1926_v0  ;;  %1552 = vmatprep.subr.bf16.mxu1 %v1926_v0 }
  0xac   : > { %1537 = vmatpush3.bf16.msra.mxu0 %v1734_v10  ;;  %1553 = vmatpush3.bf16.msra.mxu1 %v1738_v13 }
  0xad   : > { %1558 = vmatprep.subr.bf16.mxu0 %v1926_v0  ;;  %1564 = vmatprep.subr.bf16.mxu1 %v1926_v0 }
  0xaf   : > { %1539 = vmatmul.mubr.msk.bf16.vlgmr.msra.gmra.mrb[0].mxu0 %vm479_vm1, %v423_v12  ;;  %1555 = vmatmul.mubr.msk.bf16.vlgmr.msra.gmra.mrb[0].mxu1 %vm479_vm1, %v526_v14 }
  0xb0   : > { %1560 = vmatprep.mubr.msk.bf16.mxu0 %vm1927_vm0, %v1926_v0  ;;  %1566 = vmatprep.mubr.msk.bf16.mxu1 %vm1927_vm0, %v1926_v0 }
 0x182   : > { %v517_v16 = vpop.f32.mrb[0].mxu0  ;;  %v620_v22 = vpop.f32.mrb[0].mxu1 }
 0x183   : > { %v518_v17 = vadd.f32 %v1446_v15, %v517_v16  ;;  %v1540_v18 = vpop.f32.mrb[1].mxu0  ;;  %v1556_v23 = vpop.f32.mrb[1].mxu1  ;;  %v621_v27 = vadd.f32 %v1454_v26, %v620_v22 }
 0x184   : > { %v520_v19 = vpop.f32.mrb[2].mxu0  ;;  %v623_v24 = vpop.f32.mrb[2].mxu1 }
 0x185   : > { %v523_v20 = vpack.c.bf16 %v518_v17, %v518_v17  ;;  %v1541_v21 = vpop.f32.mrb[3].mxu0  ;;  %v1557_v25 = vpop.f32.mrb[3].mxu1  ;;  %v626_v31 = vpack.c.bf16 %v621_v27, %v621_v27 }
 0x187   : > { %525 = vst.msk [vmem:[#allocation2] sm:$0xf] %vm524_vm2, %v523_v20 }
 0x18e   : > { %v627_v28 = vld [vmem:[#allocation2] sm:$0xf] }
 0x18f   : > { %v633_v29 = vsel %vm628_vm3, %v627_v28, 0  ;;  %v1463_v30 = vcombine.low %v627_v28, %v627_v28 }
 0x190   : > { %1559 = vmatpush3.bf16.xpose.msra.mxu0 %v633_v29 }
 0x191   : > { %734 = vrot.lane.b32.xlu1 %v1463_v30, %s1928_s27  ;;  %682 = vrot.lane.b32.xlu0 %v1463_v30, %s1929_s15 }
 0x192   : > { %1570 = vmatprep.subr.bf16.mxu0 %v1926_v0 }
 0x195   : > { %786 = vrot.lane.b32.xlu1 %v1463_v30, %s1930_s4  ;;  %677 = vrot.lane.b32.xlu0 %v626_v31, %s1929_s15 }
 0x197   : > { %1561 = vmatmul.mubr.msk.bf16.vlgmr.msra.gmra.mrb[4].mxu0 %vm628_vm3, %v626_v31 }
 0x198   : > { %1572 = vmatprep.mubr.msk.bf16.mxu0 %vm1927_vm0, %v1926_v0 }
 0x199   : > { %784 = vrot.lane.b32.xlu1 %v626_v31, %s1930_s4  ;;  %732 = vrot.lane.b32.xlu0 %v626_v31, %s1928_s27 }
 0x19d   : > { %890 = vrot.lane.b32.xlu1 %v1463_v30, %s1931_s14  ;;  %838 = vrot.lane.b32.xlu0 %v1463_v30, %s1932_s16 }
 0x1a1   : > { %888 = vrot.lane.b32.xlu1 %v626_v31, %s1931_s14  ;;  %836 = vrot.lane.b32.xlu0 %v626_v31, %s1932_s16 }
 0x1a5   : > { %994 = vrot.lane.b32.xlu1 %v1463_v30, %s1933_s18  ;;  %942 = vrot.lane.b32.xlu0 %v1463_v30, %s1934_s13 }
 0x1a9   : > { %992 = vrot.lane.b32.xlu1 %v626_v31, %s1933_s18  ;;  %940 = vrot.lane.b32.xlu0 %v626_v31, %s1934_s13 }
 0x1ad   : > { %1098 = vrot.lane.b32.xlu1 %v1463_v30, %s1935_s20  ;;  %1046 = vrot.lane.b32.xlu0 %v1463_v30, %s1936_s2 }
 0x1b1   : > { %1096 = vrot.lane.b32.xlu1 %v626_v31, %s1935_s20  ;;  %1044 = vrot.lane.b32.xlu0 %v626_v31, %s1936_s2 }
 0x1b5   : > { %1202 = vrot.lane.b32.xlu1 %v1463_v30, %s1937_s17  ;;  %1150 = vrot.lane.b32.xlu0 %v1463_v30, %s1938_s19 }
 0x1b9   : > { %1200 = vrot.lane.b32.xlu1 %v626_v31, %s1937_s17  ;;  %1148 = vrot.lane.b32.xlu0 %v626_v31, %s1938_s19 }
 0x203   : > { %v735_v32 = vpop.permute.xlu1 %734  ;;  %v683_v33 = vpop.permute.xlu0 %682 }
 0x204   : > { %v740_v34 = vsel %vm628_vm3, %v735_v32, 0  ;;  %v688_v35 = vsel %vm628_vm3, %v683_v33, 0 }
 0x205   : > { %1565 = vmatpush3.bf16.xpose.msra.mxu1 %v688_v35  ;;  %1571 = vmatpush3.bf16.xpose.msra.mxu0 %v740_v34 }
 0x206   : > { %1576 = vmatprep.subr.bf16.mxu1 %v1926_v0  ;;  %1582 = vmatprep.subr.bf16.mxu0 %v1926_v0 }
 0x207   : > { %v787_v36 = vpop.permute.xlu1 %786  ;;  %v678_v37 = vpop.permute.xlu0 %677 }
 0x208   : > { %v792_v40 = vsel %vm628_vm3, %v787_v36, 0 }
 0x20b   : > { %v785_v38 = vpop.permute.xlu1 %784  ;;  %v733_v39 = vpop.permute.xlu0 %732 }
 0x20c   : > { %1567 = vmatmul.mubr.msk.bf16.vlgmr.msra.gmra.mrb[4].mxu1 %vm628_vm3, %v678_v37  ;;  %1573 = vmatmul.mubr.msk.bf16.vlgmr.msra.gmra.mrb[8].mxu0 %vm628_vm3, %v733_v39 }
 0x20d   : > { %1577 = vmatpush3.bf16.xpose.msra.mxu1 %v792_v40  ;;  %1578 = vmatprep.mubr.msk.bf16.mxu1 %vm1927_vm0, %v1926_v0 }
 0x20e   : > { %1588 = vmatprep.subr.bf16.mxu1 %v1926_v0  ;;  %1584 = vmatprep.mubr.msk.bf16.mxu0 %vm1927_vm0, %v1926_v0 }
 0x20f   : > { %v891_v41 = vpop.permute.xlu1 %890  ;;  %v839_v42 = vpop.permute.xlu0 %838 }
 0x210   : > { %v844_v43 = vsel %vm628_vm3, %v839_v42, 0  ;;  %v896_v46 = vsel %vm628_vm3, %v891_v41, 0 }
 0x211   : > { %1583 = vmatpush3.bf16.xpose.msra.mxu0 %v844_v43 }
 0x212   : > { %1594 = vmatprep.subr.bf16.mxu0 %v1926_v0 }
 0x213   : > { %v889_v44 = vpop.permute.xlu1 %888  ;;  %v837_v45 = vpop.permute.xlu0 %836 }
 0x214   : > { %1579 = vmatmul.mubr.msk.bf16.vlgmr.msra.gmra.mrb[8].mxu1 %vm628_vm3, %v785_v38 }
 0x215   : > { %1589 = vmatpush3.bf16.xpose.msra.mxu1 %v896_v46  ;;  %1590 = vmatprep.mubr.msk.bf16.mxu1 %vm1927_vm0, %v1926_v0 }
 0x216   : > { %1600 = vmatprep.subr.bf16.mxu1 %v1926_v0 }
 0x217   : > { %v995_v47 = vpop.permute.xlu1 %994  ;;  %v943_v48 = vpop.permute.xlu0 %942 }
 0x218   : > { %v948_v49 = vsel %vm628_vm3, %v943_v48, 0  ;;  %1585 = vmatmul.mubr.msk.bf16.vlgmr.msra.gmra.mrb[12].mxu0 %vm628_vm3, %v837_v45  ;;  %v1000_v52 = vsel %vm628_vm3, %v995_v47, 0 }
 0x219   : > { %1595 = vmatpush3.bf16.xpose.msra.mxu0 %v948_v49  ;;  %1596 = vmatprep.mubr.msk.bf16.mxu0 %vm1927_vm0, %v1926_v0 }
 0x21a   : > { %1606 = vmatprep.subr.bf16.mxu0 %v1926_v0 }
 0x21b   : > { %v993_v50 = vpop.permute.xlu1 %992  ;;  %v941_v51 = vpop.permute.xlu0 %940 }
 0x21c   : > { %1591 = vmatmul.mubr.msk.bf16.vlgmr.msra.gmra.mrb[12].mxu1 %vm628_vm3, %v889_v44 }
 0x21d   : > { %1601 = vmatpush3.bf16.xpose.msra.mxu1 %v1000_v52  ;;  %1602 = vmatprep.mubr.msk.bf16.mxu1 %vm1927_vm0, %v1926_v0 }
 0x21e   : > { %1612 = vmatprep.subr.bf16.mxu1 %v1926_v0 }
 0x21f   : > { %v1099_v53 = vpop.permute.xlu1 %1098  ;;  %v1047_v54 = vpop.permute.xlu0 %1046 }
 0x220   : > { %v1052_v55 = vsel %vm628_vm3, %v1047_v54, 0  ;;  %1597 = vmatmul.mubr.msk.bf16.vlgmr.msra.gmra.mrb[16].mxu0 %vm628_vm3, %v941_v51  ;;  %v1104_v58 = vsel %vm628_vm3, %v1099_v53, 0 }
 0x221   : > { %1607 = vmatpush3.bf16.xpose.msra.mxu0 %v1052_v55  ;;  %1608 = vmatprep.mubr.msk.bf16.mxu0 %vm1927_vm0, %v1926_v0 }
 0x222   : > { %1618 = vmatprep.subr.bf16.mxu0 %v1926_v0 }
 0x223   : > { %v1097_v56 = vpop.permute.xlu1 %1096  ;;  %v1045_v57 = vpop.permute.xlu0 %1044 }
 0x224   : > { %1603 = vmatmul.mubr.msk.bf16.vlgmr.msra.gmra.mrb[16].mxu1 %vm628_vm3, %v993_v50 }
 0x225   : > { %1613 = vmatpush3.bf16.xpose.msra.mxu1 %v1104_v58  ;;  %1614 = vmatprep.mubr.msk.bf16.mxu1 %vm1927_vm0, %v1926_v0 }
 0x226   : > { %1624 = vmatprep.subr.bf16.mxu1 %v1926_v0 }
 0x227   : > { %v1151_v59 = vpop.permute.xlu0 %1150  ;;  %v1203_v61 = vpop.permute.xlu1 %1202 }
 0x228   : > { %v1156_v60 = vsel %vm628_vm3, %v1151_v59, 0  ;;  %1609 = vmatmul.mubr.msk.bf16.vlgmr.msra.gmra.mrb[20].mxu0 %vm628_vm3, %v1045_v57  ;;  %v1208_v62 = vsel %vm628_vm3, %v1203_v61, 0 }
 0x229   : > { %1619 = vmatpush3.bf16.xpose.msra.mxu0 %v1156_v60  ;;  %1620 = vmatprep.mubr.msk.bf16.mxu0 %vm1927_vm0, %v1926_v0 }
 0x22b   : > { %v1149_v63 = vpop.permute.xlu0 %1148  ;;  %v1201_v1 = vpop.permute.xlu1 %1200 }
 0x22c   : > { %1615 = vmatmul.mubr.msk.bf16.vlgmr.msra.gmra.mrb[20].mxu1 %vm628_vm3, %v1097_v56 }
 0x22d   : > { %1625 = vmatpush3.bf16.xpose.msra.mxu1 %v1208_v62  ;;  %1626 = vmatprep.mubr.msk.bf16.mxu1 %vm1927_vm0, %v1926_v0 }
 0x230   : > { %1621 = vmatmul.mubr.msk.bf16.vlgmr.msra.gmra.mrb[24].mxu0 %vm628_vm3, %v1149_v63 }
 0x234   : > { %1627 = vmatmul.mubr.msk.bf16.vlgmr.msra.gmra.mrb[24].mxu1 %vm628_vm3, %v1201_v1 }
 0x26a   : > { %v669_v2 = vpop.f32.mrb[4].mxu0 }
 0x26b   : > { %675 = vst.msk [vmem:[%s2279_s7] sm:$0xff] %vm628_vm3, %v669_v2  ;;  %v1562_v0 = vpop.f32.mrb[5].mxu0 }
 0x26c   : > { %v672_v3 = vpop.f32.mrb[6].mxu0 }
 0x26d   : > { %v1563_v4 = vpop.f32.mrb[7].mxu0 }
 0x2df   : > { %v724_v5 = vpop.f32.mrb[4].mxu1  ;;  %v776_v6 = vpop.f32.mrb[8].mxu0 }
 0x2e0   : > { %1465 = vst.msk [vmem:[%s2279_s7 + $0x8] sm:$0xff] %vm628_vm3, %v724_v5  ;;  %1467 = vst.msk [vmem:[%s2279_s7 + $0x10] sm:$0xff] %vm628_vm3, %v776_v6  ;;  %v1568_v7 = vpop.f32.mrb[5].mxu1  ;;  %v1574_v8 = vpop.f32.mrb[9].mxu0 }
 0x2e1   : > { %v727_v9 = vpop.f32.mrb[6].mxu1  ;;  %v779_v10 = vpop.f32.mrb[10].mxu0 }
 0x2e2   : > { %v1569_v11 = vpop.f32.mrb[7].mxu1  ;;  %v1575_v12 = vpop.f32.mrb[11].mxu0 }
 0x2e7   : > { %v828_v13 = vpop.f32.mrb[8].mxu1 }
 0x2e8   : > { %1469 = vst.msk [vmem:[%s2279_s7 + $0x18] sm:$0xff] %vm628_vm3, %v828_v13  ;;  %v1580_v14 = vpop.f32.mrb[9].mxu1 }
 0x2e9   : > { %v831_v15 = vpop.f32.mrb[10].mxu1 }
 0x2ea   : > { %v1581_v16 = vpop.f32.mrb[11].mxu1 }
 0x2eb   : > { %v880_v17 = vpop.f32.mrb[12].mxu0 }
 0x2ec   : > { %1471 = vst.msk [vmem:[%s2279_s7 + $0x20] sm:$0xff] %vm628_vm3, %v880_v17  ;;  %v1586_v18 = vpop.f32.mrb[13].mxu0 }
 0x2ed   : > { %v883_v19 = vpop.f32.mrb[14].mxu0 }
 0x2ee   : > { %v1587_v20 = vpop.f32.mrb[15].mxu0 }
 0x2ef   : > { %v932_v21 = vpop.f32.mrb[12].mxu1 }
 0x2f0   : > { %1473 = vst.msk [vmem:[%s2279_s7 + $0x28] sm:$0xff] %vm628_vm3, %v932_v21  ;;  %v1592_v22 = vpop.f32.mrb[13].mxu1 }
 0x2f1   : > { %v935_v23 = vpop.f32.mrb[14].mxu1 }
 0x2f2   : > { %v1593_v24 = vpop.f32.mrb[15].mxu1 }
 0x2f3   : > { %v984_v25 = vpop.f32.mrb[16].mxu0 }
 0x2f4   : > { %1475 = vst.msk [vmem:[%s2279_s7 + $0x30] sm:$0xff] %vm628_vm3, %v984_v25  ;;  %v1598_v26 = vpop.f32.mrb[17].mxu0 }
 0x2f5   : > { %v987_v27 = vpop.f32.mrb[18].mxu0 }
 0x2f6   : > { %v1599_v28 = vpop.f32.mrb[19].mxu0 }
 0x2f7   : > { %v1036_v29 = vpop.f32.mrb[16].mxu1 }
 0x2f8   : > { %1477 = vst.msk [vmem:[%s2279_s7 + $0x38] sm:$0xff] %vm628_vm3, %v1036_v29  ;;  %v1604_v30 = vpop.f32.mrb[17].mxu1 }
 0x2f9   : > { %v1039_v31 = vpop.f32.mrb[18].mxu1 }
 0x2fa   : > { %v1605_v32 = vpop.f32.mrb[19].mxu1 }
 0x2fb   : > { %v1088_v33 = vpop.f32.mrb[20].mxu0 }
 0x2fc   : > { %1479 = vst.msk [vmem:[%s2279_s7 + $0x40] sm:$0xff] %vm628_vm3, %v1088_v33  ;;  %v1610_v34 = vpop.f32.mrb[21].mxu0 }
 0x2fd   : > { %v1091_v35 = vpop.f32.mrb[22].mxu0 }
 0x2fe   : > { %v1611_v36 = vpop.f32.mrb[23].mxu0 }
 0x2ff   : > { %v1140_v37 = vpop.f32.mrb[20].mxu1 }
 0x300   : > { %1481 = vst.msk [vmem:[%s2279_s7 + $0x48] sm:$0xff] %vm628_vm3, %v1140_v37  ;;  %v1616_v38 = vpop.f32.mrb[21].mxu1 }
 0x301   : > { %v1143_v39 = vpop.f32.mrb[22].mxu1 }
 0x302   : > { %v1617_v40 = vpop.f32.mrb[23].mxu1 }
 0x303   : > { %v1192_v41 = vpop.f32.mrb[24].mxu0 }
 0x304   : > { %1483 = vst.msk [vmem:[%s2279_s7 + $0x50] sm:$0xff] %vm628_vm3, %v1192_v41  ;;  %v1622_v42 = vpop.f32.mrb[25].mxu0 }
 0x305   : > { %v1195_v43 = vpop.f32.mrb[26].mxu0 }
 0x306   : > { %v1623_v44 = vpop.f32.mrb[27].mxu0 }
 0x307   : > { %v1244_v45 = vpop.f32.mrb[24].mxu1 }
 0x308   : > { %1485 = vst.msk [vmem:[%s2279_s7 + $0x58] sm:$0xff] %vm628_vm3, %v1244_v45  ;;  %v1628_v46 = vpop.f32.mrb[25].mxu1 }
 0x309   : > { %v1247_v47 = vpop.f32.mrb[26].mxu1 }
 0x30a   : > { %v1629_v48 = vpop.f32.mrb[27].mxu1 }
 0x30b PF: > { %s23_s26 = sadd.s32 1, %s1918_s26   ;;  %s2348_s21 = smov %s1902_s22 }
 0x30c   : > { %p20_p5 = scmp.ge.s32.totalorder %s23_s26, 4   ;;  %s2349_s22 = smov %s1906_s23 }
 0x30d   : > { %s2350_s23 = smov %s2094_s11  ;;  %s2351_s24 = smov %s1914_s25 }
 0x30e   : > { %s2352_s25 = smov %s2354_s10  ;;  %22 = sbr.rel (!%p20_p5) target bundleno = 10 (0xa), region = 128 }
 0x315   :  { %1288 = vsyncpa [#allocation4], 1 }
 0x316   :  { %1290 = vsyncpa [#allocation4 + $0x1], 1 }
 0x317   :  { %1291 = vsyncpa [#allocation6], 1 }
 0x318   :  { %1293 = vsyncpa [#allocation6 + $0x1], 1 }
 0x319   :  { %1294 = vsyncpa [#allocation9], 1 }

</bundles_post_ra>
